<compile_context>
chip_gen: v7x
topology: tpu7x:2x2x1
jax: 0.10.0
libtpu: 0.0.40
codegen_flags: <defaults>
</compile_context>

<pallas_src>
import jax
import jax.numpy as jnp
from jax.experimental import pallas as pl
from jax.experimental.pallas import tpu as pltpu


_ROW_ALIGN = 32  # int8 mask tiles pack (32, 128) per vreg tile


def _round_up(x, m):
    return ((x + m - 1) // m) * m


def _bce_coverage_kernel(logits_ref, pmask_ref, rmask_ref, out_ref):
    x = logits_ref[...].astype(jnp.float32)    # (TB, P) logits (any float dtype in HBM)
    pm = pmask_ref[...].astype(jnp.float32)    # (TB, P) 0/1 presence mask (int8 in HBM)
    y = rmask_ref[...].astype(jnp.float32)     # (TB, P) 0/1 relevance targets (int8 in HBM)

    # BCEWithLogitsLoss(reduction='none'), numerically stable form.
    bce = jnp.maximum(x, 0.0) - x * y + jnp.log1p(jnp.exp(-jnp.abs(x)))

    # masked_mean over dim=1.  Use a select (not a multiply) so garbage /
    # non-finite logits at masked positions cannot propagate NaN into the
    # row sum; for 0/1 masks this matches the original -1e10 masked fill.
    masked_bce = jnp.where(pm != 0.0, bce, 0.0)
    row_sum = jnp.sum(masked_bce, axis=1, keepdims=True)   # (TB, 1)
    row_cnt = jnp.sum(pm, axis=1, keepdims=True)           # (TB, 1)
    out_ref[...] = row_sum / jnp.maximum(row_cnt, jnp.float32(1e-13))


def bce_coverage_loss(premises_relevance_logits,
                      premises_presence_mask,
                      relevance_presence_mask,
                      *,
                      tile_rows=None):
    """Pallas-backed equivalent of BceCoverageLoss.forward. Returns a scalar."""
    b, p = premises_relevance_logits.shape

    # Dtype passthrough for logits (bf16 stays bf16 in HBM); masks go to int8.
    logits = premises_relevance_logits
    pmask = premises_presence_mask.astype(jnp.int8)
    rmask = relevance_presence_mask.astype(jnp.int8)

    logit_bytes = jnp.dtype(logits.dtype).itemsize
    row_bytes = p * (logit_bytes + 1 + 1)   # logits + two int8 masks per row

    if tile_rows is None:
        # Target ~4 MiB of live input tiles per pipeline buffer (already at
        # the measured ~85% HBM-roofline plateau; no need to grow further).
        tile_rows = (4 * 1024 * 1024) // max(row_bytes, 1)
    # Clamp so 2 pipeline buffers of all three inputs stay under ~12 MiB
    # (fits v5e's 16 MiB scoped-VMEM default; v6e/v7x scoped limits are larger).
    max_rows = (12 * 1024 * 1024) // (2 * max(row_bytes, 1))
    tile_rows = min(int(tile_rows), int(max_rows), _round_up(b, _ROW_ALIGN))
    tile_rows = int(_round_up(max(tile_rows, _ROW_ALIGN), _ROW_ALIGN))

    num_tiles = pl.cdiv(b, tile_rows)
    padded_b = num_tiles * tile_rows

    row_means = pl.pallas_call(
        _bce_coverage_kernel,
        out_shape=jax.ShapeDtypeStruct((padded_b, 1), jnp.float32),
        grid_spec=pltpu.PrefetchScalarGridSpec(
            num_scalar_prefetch=0,
            grid=(num_tiles,),
            in_specs=[
                pl.BlockSpec((tile_rows, p), lambda i: (i, 0)),
                pl.BlockSpec((tile_rows, p), lambda i: (i, 0)),
                pl.BlockSpec((tile_rows, p), lambda i: (i, 0)),
            ],
            out_specs=pl.BlockSpec((tile_rows, 1), lambda i: (i, 0)),
        ),
        compiler_params=pltpu.CompilerParams(
            dimension_semantics=("parallel",)),
    )(logits, pmask, rmask)

    # Rows beyond the true batch (padded / out-of-bounds blocks) are sliced
    # away here, so no in-kernel padded-row masking is needed.
    return jnp.sum(row_means[:b, 0]) / jnp.float32(b)


def _reference(logits, pmask, rmask):
    # Pure-JAX reference mirroring the original PyTorch/AllenNLP semantics
    # (including the -1e10 masked fill) to validate the kernel's shortcut.
    logits = logits.astype(jnp.float32)
    pmask = pmask.astype(jnp.float32)
    rmask = rmask.astype(jnp.float32)
    x = logits * pmask + (-1e10) * (1.0 - pmask)
    bce = jnp.maximum(x, 0.0) - x * rmask + jnp.log1p(jnp.exp(-jnp.abs(x)))
    row_sum = jnp.sum(bce * pmask, axis=1)
    row_cnt = jnp.sum(pmask, axis=1)
    row_mean = row_sum / jnp.maximum(row_cnt, 1e-13)
    return jnp.mean(row_mean)


if __name__ == "__main__":
    key = jax.random.PRNGKey(0)
    k1, k2, k3 = jax.random.split(key, 3)

    # B intentionally NOT a multiple of the 32-row tile to exercise the
    # partial-boundary-block path; P lane-aligned.
    B, P = 40, 128

    logits = jax.random.normal(k1, (B, P), dtype=jnp.float32)
    # Presence mask: guarantee at least one premise present per row.
    pmask = (jax.random.uniform(k2, (B, P)) > 0.3).astype(jnp.float32)
    pmask = pmask.at[:, 0].set(1.0)
    # Relevance (targets), only meaningful where present.
    rmask = (jax.random.uniform(k3, (B, P)) > 0.5).astype(jnp.float32) * pmask

    ref = _reference(logits, pmask, rmask)

    # Explicit small tile: 2 grid steps, last one partially out of bounds.
    loss = bce_coverage_loss(logits, pmask, rmask, tile_rows=32)
    jax.block_until_ready(loss)
    assert jnp.allclose(loss, ref, atol=1e-5, rtol=1e-5), (loss, ref)

    # Default (auto) tile size: single oversize boundary block, still correct.
    loss2 = bce_coverage_loss(logits, pmask, rmask)
    jax.block_until_ready(loss2)
    assert jnp.allclose(loss2, ref, atol=1e-5, rtol=1e-5), (loss2, ref)

    # bf16 logits pass straight through to the kernel (halves logit HBM bytes).
    logits_bf16 = logits.astype(jnp.bfloat16)
    ref_bf16 = _reference(logits_bf16, pmask, rmask)
    loss3 = bce_coverage_loss(logits_bf16, pmask, rmask, tile_rows=32)
    jax.block_until_ready(loss3)
    assert jnp.allclose(loss3, ref_bf16, atol=1e-4, rtol=1e-4), (loss3, ref_bf16)

    print("KERNEL_OK")
</pallas_src>

<mosaic_0001>
module attributes {stable_mosaic.version = 11 : i64} {
  func.func @_bce_coverage_kernel(%arg0: i32, %arg1: memref<32x128xf32, #tpu.memory_space<vmem>>, %arg2: memref<32x128xi8, #tpu.memory_space<vmem>>, %arg3: memref<32x128xi8, #tpu.memory_space<vmem>>, %arg4: memref<32x1xf32, #tpu.memory_space<vmem>>) attributes {dimension_semantics = [#tpu.dimension_semantics<parallel>], iteration_bounds = array<i64: 2>, scalar_prefetch = 0 : i64, scratch_operands = 0 : i64, tpu.core_type = #tpu.core_type<tc>, window_params = [{transform_indices = @transform_0, window_bounds = array<i64: 32, 128>}, {transform_indices = @transform_1, window_bounds = array<i64: 32, 128>}, {transform_indices = @transform_2, window_bounds = array<i64: 32, 128>}, {transform_indices = @transform_3, window_bounds = array<i64: 32, 1>}]} {
    %c0 = arith.constant 0 : index
    %c0_0 = arith.constant 0 : index
    %0 = vector.load %arg1[%c0, %c0_0] : memref<32x128xf32, #tpu.memory_space<vmem>>, vector<32x128xf32>
    %c0_1 = arith.constant 0 : index
    %c0_2 = arith.constant 0 : index
    %1 = vector.load %arg2[%c0_1, %c0_2] : memref<32x128xi8, #tpu.memory_space<vmem>>, vector<32x128xi8>
    %2 = arith.sitofp %1 : vector<32x128xi8> to vector<32x128xf32>
    %c0_3 = arith.constant 0 : index
    %c0_4 = arith.constant 0 : index
    %3 = vector.load %arg3[%c0_3, %c0_4] : memref<32x128xi8, #tpu.memory_space<vmem>>, vector<32x128xi8>
    %4 = arith.sitofp %3 : vector<32x128xi8> to vector<32x128xf32>
    %cst = arith.constant 0.000000e+00 : f32
    %5 = vector.broadcast %cst : f32 to vector<32x128xf32>
    %6 = arith.maximumf %0, %5 : vector<32x128xf32>
    %7 = arith.mulf %0, %4 : vector<32x128xf32>
    %8 = arith.subf %6, %7 : vector<32x128xf32>
    %9 = math.absf %0 : vector<32x128xf32>
    %cst_5 = arith.constant 0.000000e+00 : f32
    %10 = vector.broadcast %cst_5 : f32 to vector<32x128xf32>
    %11 = arith.subf %10, %9 : vector<32x128xf32>
    %12 = math.exp %11 : vector<32x128xf32>
    %13 = math.log1p %12 : vector<32x128xf32>
    %14 = arith.addf %8, %13 : vector<32x128xf32>
    %cst_6 = arith.constant 0.000000e+00 : f32
    %15 = vector.broadcast %cst_6 : f32 to vector<32x128xf32>
    %16 = arith.cmpf one, %2, %15 : vector<32x128xf32>
    %cst_7 = arith.constant 0.000000e+00 : f32
    %17 = vector.broadcast %cst_7 : f32 to vector<32x128xf32>
    %18 = arith.select %16, %14, %17 : vector<32x128xi1>, vector<32x128xf32>
    %cst_8 = arith.constant dense<0.000000e+00> : vector<32xf32>
    %19 = vector.multi_reduction <add>, %18, %cst_8 [1] : vector<32x128xf32> to vector<32xf32>
    %20 = vector.shape_cast %19 : vector<32xf32> to vector<32x1xf32>
    %cst_9 = arith.constant dense<0.000000e+00> : vector<32xf32>
    %21 = vector.multi_reduction <add>, %2, %cst_9 [1] : vector<32x128xf32> to vector<32xf32>
    %22 = vector.shape_cast %21 : vector<32xf32> to vector<32x1xf32>
    %cst_10 = arith.constant 9.99999982E-14 : f32
    %23 = vector.broadcast %cst_10 : f32 to vector<32x1xf32>
    %24 = arith.maximumf %22, %23 : vector<32x1xf32>
    %25 = arith.divf %20, %24 : vector<32x1xf32>
    %c0_11 = arith.constant 0 : index
    %c0_12 = arith.constant 0 : index
    %26 = vector.load %arg4[%c0_11, %c0_12] : memref<32x1xf32, #tpu.memory_space<vmem>>, vector<32x1xf32>
    tpu.vector_store %arg4[%c0_11, %c0_12], %25 {strides = array<i32>} : memref<32x1xf32, #tpu.memory_space<vmem>>, vector<32x1xf32>,
    return
  }
  func.func @transform_0(%arg0: i32) -> (i32, i32) {
    %c0_i32 = arith.constant 0 : i32
    %c0_i32_0 = arith.constant 0 : i32
    return %arg0, %c0_i32 : i32, i32
  }
  func.func @transform_1(%arg0: i32) -> (i32, i32) {
    %c0_i32 = arith.constant 0 : i32
    %c0_i32_0 = arith.constant 0 : i32
    return %arg0, %c0_i32 : i32, i32
  }
  func.func @transform_2(%arg0: i32) -> (i32, i32) {
    %c0_i32 = arith.constant 0 : i32
    %c0_i32_0 = arith.constant 0 : i32
    return %arg0, %c0_i32 : i32, i32
  }
  func.func @transform_3(%arg0: i32) -> (i32, i32) {
    %c0_i32 = arith.constant 0 : i32
    %c0_i32_0 = arith.constant 0 : i32
    return %arg0, %c0_i32 : i32, i32
  }
}

</mosaic_0001>

<bundles_post_ra>
// kernel: tpu_custom_call.1
= control target key start
LH: loop header
LB: loop body
LE: loop exit
PB: predicated region body
PF: predicated region fallthrough
CT: control target
= control target key end

     0   :  { %8 = vsyncpa [#allocation3], 0  ;;  %s1075_s0 = inlined_call_operand.hbm [shape: f32[40,128], index: 0, kind: input, shape index: {}]   ;;  %s1076_s1 = inlined_call_operand.hbm [shape: s8[40,128], index: 1, kind: input, shape index: {}]   ;;  %s1077_s2 = inlined_call_operand.hbm [shape: s8[40,128], index: 2, kind: input, shape index: {}]   ;;  %s1078_s3 = inlined_call_operand.vmem [shape: f32[64,1], index: 3, kind: output, shape index: {}]  }
   0x1   :  { %10 = vsyncpa [#allocation3 + $0x1], 0 }
   0x2   :  { %11 = vsyncpa [#allocation5], 0 }
   0x3   :  { %13 = vsyncpa [#allocation5 + $0x1], 0  ;;  %s821_s12 = smov 0   ;;  %s823_s13 = smov 0  }
   0x4   :  { %s825_s14 = smov 0   ;;  %s827_s15 = smov 0  }
   0x5 LB: > { %s840_s16 = sadd.s32 4294967295, %s790_s15   ;;  %s843_s17 = sadd.s32 1, %s790_s15   ;;  %s790_s15 = sphi %s827_s15, %s1084_s15   ;;  %s786_s14 = sphi %s825_s14, %s1083_s14   ;;  %s782_s13 = sphi %s823_s13, %s1082_s13   ;;  %s778_s12 = sphi %s821_s12, %s1081_s12  }
   0x6   : > { %s23_s18 = ssub.s32 %s790_s15, %s843_s17  ;;  %s26_s19 = sadd.s32 1, %s786_s14 }
   0x7   : > { %p24_p0 = scmp.eq.s32.totalorder %s23_s18, 0  ;;  %p33_p1 = scmp.ne.s32.totalorder %s786_s14, %s782_s13 }
   0x8   : > { %p34_p2 = scmp.eq.s32.totalorder %s790_s15, 0  ;;  %p39_p3 = scmp.ne.s32.totalorder %s782_s13, %s778_s12 }
   0x9   : > { %s853_s20 = scalar_select %p24_p0, %s786_s14, %s26_s19  }
   0xa   : > { %p855_p4 = por %p34_p2, %p33_p1  ;;  %p40_p5 = scmp.eq.s32.totalorder %s840_s16, 0 }
   0xb   : > { %p552_p7 = scmp.ge.s32.totalorder %s790_s15, 2 }
   0xc   : > { %p860_p6 = por %p40_p5, %p39_p3 }
   0xd   : > { %137 = sbr.rel (%p552_p7) target bundleno = 125 (0x7d), region = 16 }
  0x14   : > { %140 = sbr.rel (!%p855_p4) target bundleno = 55 (0x37), region = 20  ;;  %s141_s23 = sand.u32 (%p855_p4), 1, %s786_s14  }
  0x15   : > { %s554_s24 = sshll.u32 (%p855_p4), %s790_s15, 2  ;;  %s553_s25 = sshll.u32 (%p855_p4), %s141_s23, 5 }
  0x16   : > { %s147_s26 = ssub.s32 (%p855_p4), 5, %s554_s24  ;;  %s872_s29 = scalar_lea.sflag (%p855_p4), [#allocation3], %s141_s23 }
  0x17   : > { %p148_p8 = scmp.lt.s32.totalorder (%p855_p4), %s147_s26, 4  ;;  %s145_s30 = scalar_lea.vmem (%p855_p4), [#allocation2], %s553_s25 }
  0x1b   : > { %s1086_s26 = smov (!%p148_p8, %s147_s26), 4 }
  0x1c   : > { %s869_s27 = sshll.u32 %s1086_s26, 7 }
  0x1d   : > { %s152_s28 = ssub.s32 512, %s869_s27 }
  0x1e   : > { %153 = vsyncadd %s872_s29, %s152_s28  ;;  %p556_p9 = scmp.ne.s32.totalorder %s869_s27, 0  ;;  %s582_s4 = sshll.u32 %s790_s15, 9 }
  0x1f   : > { %s880_s7 = scalar_lea.hbm %s1075_s0, %s582_s4  ;;  %s158_s8 = sshll.u32 %s145_s30, 4  ;;  %s882_s8 = int_to_ptr.vmem [resolvable:$true] %s158_s8 }
  0x20   : > { %s668_s9 = scalar_lea.hbm %s880_s7, %s869_s27  ;;  %s672_s12 = scalar_lea.hbm %s1075_s0, 640 }
  0x21   : > { %p669_p10 = scmp.ne.s32.totalorder %s880_s7, %s668_s9  ;;  %p673_p13 = scmp.lt.u32.totalorder %s880_s7, %s1075_s0 }
  0x22   : > { %p674_p0 = scmp.lt.u32.totalorder %s672_s12, %s668_s9  ;;  %p676_p2 = scmp.lt.u32.totalorder %s668_s9, %s880_s7 }
  0x23   : > { %p670_p11 = pnand %p669_p10, %p556_p9 }
  0x24   : > { %p675_p1 = por %p674_p0, %p673_p13 }
  0x25   : > { %p671_p12 = pneg %p670_p11 }
  0x26   : > { %p677_p3 = por %p676_p2, %p675_p1 }
  0x28   : > { %p678_p5 = pnand %p677_p3, %p671_p12 }
  0x2a   : > { %681 = shalt.err (!%p678_p5)
}
  0x2b   : > { %s682_s23 = scalar_lea.vmem %s882_s8, %s869_s27  ;;  %s792_s24 = smov [#allocation2]  }
  0x2c   : > { %p683_p7 = scmp.ne.s32.totalorder %s882_s8, %s682_s23  ;;  %s686_s25 = sshll.u32 %s792_s24, 4  ;;  %s687_s25 = int_to_ptr.vmem [resolvable:$false] %s686_s25 }
  0x2d   : > { %s688_s26 = scalar_lea.vmem %s687_s25, 1024  ;;  %p689_p11 = scmp.lt.s32.totalorder %s882_s8, %s687_s25 }
  0x2e   : > { %p684_p8 = pnand %p683_p7, %p556_p9  ;;  %p690_p13 = scmp.lt.s32.totalorder %s688_s26, %s682_s23 }
  0x30   : > { %p685_p10 = pneg %p684_p8  ;;  %p691_p0 = por %p690_p13, %p689_p11 }
  0x32   : > { %p692_p1 = pnand %p691_p0, %p685_p10 }
  0x34   : > { %695 = shalt.err (!%p692_p1)
}
  0x35   : > { %s793_s28 = smov 128   ;;  %s794_s30 = smov 8  }
  0x36   : > { %164 = dma.hbm_to_vmem [thread:$0]  (%p556_p9), %s880_s7, %s869_s27, %s882_s8, %s872_s29, %s793_s28, %s793_s28, %s794_s30  }
  0x37 PF: > { %167 = sbr.rel (!%p855_p4) target bundleno = 90 (0x5a), region = 24  ;;  %s168_s4 = sand.u32 (%p855_p4), 1, %s790_s15  }
  0x38   : > { %s170_s5 = sand.u32 (%p855_p4), 1, %s786_s14   ;;  %s561_s9 = sshll.u32 (%p855_p4), %s790_s15, 2 }
  0x39   : > { %s560_s6 = sshll.u32 (%p855_p4), %s170_s5, 3  ;;  %s174_s10 = ssub.s32 (%p855_p4), 5, %s561_s9 }
  0x3a   : > { %p175_p12 = scmp.lt.s32.totalorder (%p855_p4), %s174_s10, 4  ;;  %s917_s18 = scalar_lea.sflag (%p855_p4), [#allocation5], %s168_s4 }
  0x3b   : > { %s172_s27 = scalar_lea.vmem (%p855_p4), [#allocation4], %s560_s6 }
  0x3e   : > { %s1088_s10 = smov (!%p175_p12, %s174_s10), 4 }
  0x3f   : > { %s914_s11 = sshll.u32 %s1088_s10, 5 }
  0x40   : > { %s179_s12 = ssub.s32 128, %s914_s11 }
  0x41   : > { %180 = vsyncadd %s917_s18, %s179_s12  ;;  %p563_p9 = scmp.ne.s32.totalorder %s914_s11, 0  ;;  %s583_s29 = sshll.u32 %s790_s15, 7 }
  0x42   : > { %s925_s19 = scalar_lea.hbm %s1076_s1, %s583_s29  ;;  %s185_s23 = sshll.u32 %s172_s27, 4  ;;  %s927_s23 = int_to_ptr.vmem [resolvable:$true] %s185_s23 }
  0x43   : > { %s696_s24 = scalar_lea.hbm %s925_s19, %s914_s11  ;;  %s700_s28 = scalar_lea.hbm %s1076_s1, 160 }
  0x44   : > { %p697_p2 = scmp.ne.s32.totalorder %s925_s19, %s696_s24  ;;  %p701_p7 = scmp.lt.u32.totalorder %s925_s19, %s1076_s1 }
  0x45   : > { %p702_p8 = scmp.lt.u32.totalorder %s700_s28, %s696_s24  ;;  %p704_p11 = scmp.lt.u32.totalorder %s696_s24, %s925_s19 }
  0x46   : > { %p698_p3 = pnand %p697_p2, %p563_p9 }
  0x47   : > { %p703_p10 = por %p702_p8, %p701_p7 }
  0x48   : > { %p699_p5 = pneg %p698_p3 }
  0x49   : > { %p705_p13 = por %p704_p11, %p703_p10 }
  0x4b   : > { %p706_p0 = pnand %p705_p13, %p699_p5 }
  0x4d   : > { %709 = shalt.err (!%p706_p0)
}
  0x4e   : > { %s710_s5 = scalar_lea.vmem %s927_s23, %s914_s11  ;;  %s795_s6 = smov [#allocation4]  }
  0x4f   : > { %p711_p1 = scmp.ne.s32.totalorder %s927_s23, %s710_s5  ;;  %s714_s9 = sshll.u32 %s795_s6, 4  ;;  %s715_s9 = int_to_ptr.vmem [resolvable:$false] %s714_s9 }
  0x50   : > { %s716_s10 = scalar_lea.vmem %s715_s9, 256  ;;  %p717_p3 = scmp.lt.s32.totalorder %s927_s23, %s715_s9 }
  0x51   : > { %p712_p12 = pnand %p711_p1, %p563_p9  ;;  %p718_p7 = scmp.lt.s32.totalorder %s716_s10, %s710_s5 }
  0x53   : > { %p713_p2 = pneg %p712_p12  ;;  %p719_p8 = por %p718_p7, %p717_p3 }
  0x55   : > { %p720_p10 = pnand %p719_p8, %p713_p2 }
  0x57   : > { %723 = shalt.err (!%p720_p10)
}
  0x58   : > { %s796_s12 = smov 32   ;;  %s797_s27 = smov 2  }
  0x59   : > { %191 = dma.hbm_to_vmem [thread:$0]  (%p563_p9), %s925_s19, %s914_s11, %s927_s23, %s917_s18, %s796_s12, %s796_s12, %s797_s27  }
  0x5a PF: > { %194 = sbr.rel (!%p855_p4) target bundleno = 125 (0x7d), region = 28  ;;  %s195_s29 = sand.u32 (%p855_p4), 1, %s790_s15  }
  0x5b   : > { %s197_s7 = sand.u32 (%p855_p4), 1, %s786_s14   ;;  %s568_s24 = sshll.u32 (%p855_p4), %s790_s15, 2 }
  0x5c   : > { %s567_s8 = sshll.u32 (%p855_p4), %s197_s7, 3  ;;  %s201_s25 = ssub.s32 (%p855_p4), 5, %s568_s24 }
  0x5d   : > { %p202_p5 = scmp.lt.s32.totalorder (%p855_p4), %s201_s25, 4  ;;  %s962_s30 = scalar_lea.sflag (%p855_p4), [#allocation5], %s195_s29 }
  0x5e   : > { %s199_s11 = scalar_lea.vmem (%p855_p4), [#allocation6], %s567_s8 }
  0x61   : > { %s1090_s25 = smov (!%p202_p5, %s201_s25), 4 }
  0x62   : > { %s959_s26 = sshll.u32 %s1090_s25, 5 }
  0x63   : > { %s206_s28 = ssub.s32 128, %s959_s26 }
  0x64   : > { %207 = vsyncadd %s962_s30, %s206_s28  ;;  %p570_p4 = scmp.ne.s32.totalorder %s959_s26, 0  ;;  %s584_s21 = sshll.u32 %s790_s15, 7 }
  0x65   : > { %s970_s23 = scalar_lea.hbm %s1077_s2, %s584_s21  ;;  %s212_s4 = sshll.u32 %s199_s11, 4  ;;  %s972_s4 = int_to_ptr.vmem [resolvable:$true] %s212_s4 }
  0x66   : > { %s724_s5 = scalar_lea.hbm %s970_s23, %s959_s26  ;;  %s728_s10 = scalar_lea.hbm %s1077_s2, 160 }
  0x67   : > { %p725_p9 = scmp.ne.s32.totalorder %s970_s23, %s724_s5  ;;  %p729_p0 = scmp.lt.u32.totalorder %s970_s23, %s1077_s2 }
  0x68   : > { %p730_p1 = scmp.lt.u32.totalorder %s728_s10, %s724_s5  ;;  %p732_p2 = scmp.lt.u32.totalorder %s724_s5, %s970_s23 }
  0x69   : > { %p726_p11 = pnand %p725_p9, %p570_p4 }
  0x6a   : > { %p731_p12 = por %p730_p1, %p729_p0 }
  0x6b   : > { %p727_p13 = pneg %p726_p11 }
  0x6c   : > { %p733_p3 = por %p732_p2, %p731_p12 }
  0x6e   : > { %p734_p7 = pnand %p733_p3, %p727_p13 }
  0x70   : > { %737 = shalt.err (!%p734_p7)
}
  0x71   : > { %s738_s29 = scalar_lea.vmem %s972_s4, %s959_s26  ;;  %s798_s7 = smov [#allocation6]  }
  0x72   : > { %p739_p8 = scmp.ne.s32.totalorder %s972_s4, %s738_s29  ;;  %s742_s8 = sshll.u32 %s798_s7, 4  ;;  %s743_s8 = int_to_ptr.vmem [resolvable:$false] %s742_s8 }
  0x73   : > { %s744_s24 = scalar_lea.vmem %s743_s8, 256  ;;  %p745_p9 = scmp.lt.s32.totalorder %s972_s4, %s743_s8 }
  0x74   : > { %p740_p10 = pnand %p739_p8, %p570_p4  ;;  %p746_p11 = scmp.lt.s32.totalorder %s744_s24, %s738_s29 }
  0x76   : > { %p741_p5 = pneg %p740_p10  ;;  %p747_p0 = por %p746_p11, %p745_p9 }
  0x78   : > { %p748_p1 = pnand %p747_p0, %p741_p5 }
  0x7a   : > { %751 = shalt.err (!%p748_p1)
}
  0x7b   : > { %s799_s25 = smov 32   ;;  %s800_s28 = smov 2  }
  0x7c   : > { %218 = dma.hbm_to_vmem [thread:$0]  (%p570_p4), %s970_s23, %s959_s26, %s972_s4, %s962_s30, %s799_s25, %s799_s25, %s800_s28  }
  0x7d PF: > { %p574_p13 = scmp.ge.s32.totalorder %s790_s15, 1  ;;  %p220_p12 = scmp.lt.s32.totalorder %s790_s15, 3 }
  0x7f   : > { %p221_p2 = pnand %p574_p13, %p220_p12 }
  0x80   : > { %s1002_s11 = sand.u32 (!%p221_p2), 1, %s782_s13  }
  0x81   : > { %224 = sbr.rel (%p221_p2) target bundleno = 328 (0x148), region = 32  ;;  %s575_s21 = sshll.u32 (!%p221_p2), %s1002_s11, 5 }
  0x82   : > { %s227_s18 = scalar_lea.sflag (!%p221_p2), [#allocation3], %s1002_s11  ;;  %s230_s19 = scalar_lea.vmem (!%p221_p2), [#allocation2], %s575_s21 }
  0x88   : > { %769 = dma.done.wait (%p860_p6), %s227_s18, 512  }
  0x89   : > { %771 = vsyncadd (%p860_p6), %s227_s18, 4294966784  ;;  %s235_s15 = sand.u32 1, %s840_s16   ;;  %s576_s26 = sshll.u32 %s1002_s11, 3 }
  0x8a   : > { %s236_s30 = scalar_lea.sflag [#allocation5], %s235_s15  ;;  %s239_s23 = scalar_lea.vmem [#allocation4], %s576_s26 }
  0x8b   : > { %773 = dma.done.wait (%p860_p6), %s236_s30, 256  }
  0x8c   : > { %775 = vsyncadd (%p860_p6), %s236_s30, 4294967040  ;;  %v586_v0 = vld [vmem:[%s239_s23] sm:$0xff]   ;;  %v1027_v11 = vld [vmem:[%s230_s19 + $0x10] sm:$0xff]  ;;  %s248_s22 = scalar_lea.vmem [#allocation6], %s576_s26  ;;  %s578_s4 = sshll.u32 %s840_s16, 2  ;;  %vm434_vm8 = vcmask 7168  }
  0x8d   : > { %v1018_v1 = vld [vmem:[%s230_s19] sm:$0xff]  ;;  %v587_v2 = vunpack.c.0.s8 %v586_v0  ;;  %v591_v3 = vunpack.c.2.s8 %v586_v0  ;;  %v588_v4 = vunpack.c.1.s8 %v586_v0  ;;  %v592_v5 = vunpack.c.3.s8 %v586_v0  ;;  %v1021_v7 = vld [vmem:[%s230_s19 + $0x8] sm:$0xff]  ;;  %v1037_v18 = vld [vmem:[%s230_s19 + $0x18] sm:$0xff]  ;;  %p297_p6 = scmp.lt.s32.totalorder %s578_s4, 7 }
  0x8e   : > { %v342_v6 = vand.u32 2147483647, %v1018_v1  ;;  %v343_v14 = vand.u32 2147483647, %v1021_v7  ;;  %v344_v17 = vand.u32 2147483647, %v1027_v11 }
  0x8f   : > { %v1023_v8 = vcvt.s32.f32 %v587_v2  ;;  %v1025_v9 = vcvt.s32.f32 %v591_v3  ;;  %v1031_v12 = vcvt.s32.f32 %v588_v4  ;;  %v1033_v13 = vcvt.s32.f32 %v592_v5  ;;  %v594_v25 = vld [vmem:[%s248_s22] sm:$0xff]   ;;  %s1092_s4 = smov (!%p297_p6, %s578_s4), 7 }
  0x90   : > { %v346_v10 = vsub.f32 0.0, %v342_v6  ;;  %v347_v16 = vsub.f32 0.0, %v343_v14  ;;  %v348_v20 = vsub.f32 0.0, %v344_v17  ;;  %v345_v21 = vand.u32 2147483647, %v1037_v18  ;;  %s579_s5 = sshll.u32 %s1092_s4, 3 }
  0x91   : > { %414 = vadd.xlane.f32.xlu0 %v1023_v8  ;;  %418 = vadd.xlane.f32.xlu1 %v1025_v9  ;;  %v595_v27 = vunpack.c.0.s8 %v594_v25  ;;  %v596_v30 = vunpack.c.1.s8 %v594_v25  ;;  %v599_v35 = vunpack.c.2.s8 %v594_v25  ;;  %v330_v40 = vmax.f32 %v1018_v1, 0.0  ;;  %s300_s10 = scalar_lea.vmem %s1078_s3, %s579_s5 }
  0x92   : > { %v350_v15 = vmul.f32 1.442695, %v346_v10  ;;  %v352_v19 = vmul.f32 1.442695, %v347_v16  ;;  %v354_v22 = vmul.f32 1.442695, %v348_v20  ;;  %v600_v42 = vunpack.c.3.s8 %v594_v25 }
  0x93   : > { %v349_v23 = vsub.f32 0.0, %v345_v21  ;;  %v326_v34 = vcvt.s32.f32 %v595_v27  ;;  %v327_v37 = vcvt.s32.f32 %v596_v30  ;;  %v328_v47 = vcvt.s32.f32 %v599_v35 }
  0x94   : > { %644 = vpow2.f32 %v350_v15  ;;  %v331_v48 = vmax.f32 %v1021_v7, 0.0  ;;  %v329_v53 = vcvt.s32.f32 %v600_v42  ;;  %v332_v59 = vmax.f32 %v1027_v11, 0.0 }
  0x95   : > { %416 = vadd.xlane.f32.xlu0 %v1031_v12  ;;  %420 = vadd.xlane.f32.xlu1 %v1033_v13  ;;  %646 = vpow2.f32 %v352_v19  ;;  %v356_v24 = vmul.f32 1.442695, %v349_v23  ;;  %v334_v43 = vmul.f32 %v326_v34, %v1018_v1  ;;  %v335_v49 = vmul.f32 %v327_v37, %v1021_v7 }
  0x96   : > { %648 = vpow2.f32 %v354_v22  ;;  %v336_v60 = vmul.f32 %v328_v47, %v1027_v11  ;;  %vm398_vm1 = vcmp.ne.f32.partialorder %v1023_v8, 0.0  ;;  %v333_v0 = vmax.f32 %v1037_v18, 0.0 }
  0x97   : > { %650 = vpow2.f32 %v356_v24  ;;  %v338_v56 = vsub.f32 %v330_v40, %v334_v43  ;;  %v339_v62 = vsub.f32 %v331_v48, %v335_v49  ;;  %v337_v3 = vmul.f32 %v329_v53, %v1037_v18 }
  0x98   : > { %v340_v15 = vsub.f32 %v332_v59, %v336_v60  ;;  %vm399_vm4 = vcmp.ne.f32.partialorder %v1031_v12, 0.0  ;;  %vm400_vm5 = vcmp.ne.f32.partialorder %v1025_v9, 0.0  ;;  %vm401_vm7 = vcmp.ne.f32.partialorder %v1033_v13, 0.0 }
  0x99   : > { %v341_v22 = vsub.f32 %v333_v0, %v337_v3 }
  0x9e   : > { %v645_v26 = vpop.eup %644 }
  0x9f   : > { %v358_v28 = vadd.f32 1.0, %v645_v26  ;;  %v647_v29 = vpop.eup %646  ;;  %v361_v31 = vmul.f32 -0.5, %v645_v26  ;;  %v364_v44 = vand.u32 2147483647, %v645_v26 }
  0xa0   : > { %v367_v32 = vadd.f32 1.0, %v647_v29  ;;  %v649_v33 = vpop.eup %648  ;;  %v370_v38 = vmul.f32 -0.5, %v647_v29  ;;  %v373_v52 = vand.u32 2147483647, %v647_v29 }
  0xa1   : > { %652 = vlog2.f32 %v358_v28  ;;  %v376_v36 = vadd.f32 1.0, %v649_v33  ;;  %v651_v39 = vpop.eup %650  ;;  %v362_v41 = vadd.f32 1.0, %v361_v31  ;;  %v379_v45 = vmul.f32 -0.5, %v649_v33 }
  0xa2   : > { %654 = vlog2.f32 %v367_v32  ;;  %v385_v46 = vadd.f32 1.0, %v651_v39  ;;  %v371_v50 = vadd.f32 1.0, %v370_v38  ;;  %v388_v54 = vmul.f32 -0.5, %v651_v39 }
  0xa3   : > { %656 = vlog2.f32 %v376_v36  ;;  %v363_v51 = vmul.f32 %v645_v26, %v362_v41  ;;  %vm365_vm0 = vcmp.lt.f32.partialorder %v364_v44, 0.0004427343  ;;  %v380_v57 = vadd.f32 1.0, %v379_v45 }
  0xa4   : > { %658 = vlog2.f32 %v385_v46  ;;  %v382_v61 = vand.u32 2147483647, %v649_v33  ;;  %v372_v63 = vmul.f32 %v647_v29, %v371_v50  ;;  %vm374_vm2 = vcmp.lt.f32.partialorder %v373_v52, 0.0004427343 }
  0xa5   : > { %v389_v4 = vadd.f32 1.0, %v388_v54  ;;  %v381_v7 = vmul.f32 %v649_v33, %v380_v57  ;;  %v391_v10 = vand.u32 2147483647, %v651_v39 }
  0xa6   : > { %vm383_vm3 = vcmp.lt.f32.partialorder %v382_v61, 0.0004427343 }
  0xa7   : > { %v390_v20 = vmul.f32 %v651_v39, %v389_v4  ;;  %vm392_vm6 = vcmp.lt.f32.partialorder %v391_v10, 0.0004427343 }
  0xab   : > { %v653_v55 = vpop.eup %652 }
  0xac   : > { %v360_v58 = vmul.f32 0.6931472, %v653_v55  ;;  %v655_v1 = vpop.eup %654 }
  0xad   : > { %v369_v6 = vmul.f32 0.6931472, %v655_v1  ;;  %v657_v14 = vpop.eup %656 }
  0xae   : > { %v366_v2 = vsel %vm365_vm0, %v363_v51, %v360_v58  ;;  %v378_v17 = vmul.f32 0.6931472, %v657_v14  ;;  %v659_v21 = vpop.eup %658 }
  0xaf   : > { %v394_v5 = vadd.f32 %v366_v2, %v338_v56  ;;  %v375_v16 = vsel %vm374_vm2, %v372_v63, %v369_v6  ;;  %v387_v25 = vmul.f32 0.6931472, %v659_v21 }
  0xb0   : > { %v395_v19 = vadd.f32 %v375_v16, %v339_v62  ;;  %v384_v18 = vsel %vm383_vm3, %v381_v7, %v378_v17 }
  0xb1   : > { %v402_v11 = vsel %vm398_vm1, %v394_v5, 0.0  ;;  %v396_v24 = vadd.f32 %v384_v18, %v340_v15  ;;  %v393_v26 = vsel %vm392_vm6, %v390_v20, %v387_v25 }
  0xb2   : > { %406 = vadd.xlane.f32.xlu0 %v402_v11  ;;  %v403_v23 = vsel %vm399_vm4, %v395_v19, 0.0  ;;  %v397_v12 = vadd.f32 %v393_v26, %v341_v22 }
  0xb3   : > { %408 = vadd.xlane.f32.xlu1 %v403_v23  ;;  %v404_v8 = vsel %vm400_vm5, %v396_v24, 0.0 }
  0xb4   : > { %v405_v27 = vsel %vm401_vm7, %v397_v12, 0.0 }
  0xb6   : > { %410 = vadd.xlane.f32.xlu0 %v404_v8 }
  0xb7   : > { %412 = vadd.xlane.f32.xlu1 %v405_v27 }
 0x11e   : > { %v415_v28 = vpop.xlane.xlu0 %414  ;;  %v419_v29 = vpop.xlane.xlu1 %418 }
 0x11f   : > { %v422_v30 = vmax.f32 %v415_v28, 1e-13  ;;  %v424_v33 = vmax.f32 %v419_v29, 1e-13 }
 0x121   : > { %660 = vrcp.f32 %v422_v30 }
 0x122   : > { %v417_v31 = vpop.xlane.xlu0 %416  ;;  %v421_v32 = vpop.xlane.xlu1 %420 }
 0x123   : > { %v423_v9 = vmax.f32 %v417_v31, 1e-13  ;;  %v425_v34 = vmax.f32 %v421_v32, 1e-13 }
 0x125   : > { %662 = vrcp.f32 %v423_v9 }
 0x126   : > { %664 = vrcp.f32 %v424_v33 }
 0x127   : > { %666 = vrcp.f32 %v425_v34 }
 0x12b   : > { %v661_v13 = vpop.eup %660 }
 0x12f   : > { %v663_v36 = vpop.eup %662 }
 0x130   : > { %v665_v40 = vpop.eup %664 }
 0x131   : > { %v667_v42 = vpop.eup %666 }
 0x13f   : > { %v407_v35 = vpop.xlane.xlu0 %406 }
 0x140   : > { %v427_v37 = vmul.f32 %v661_v13, %v407_v35  ;;  %v409_v38 = vpop.xlane.xlu1 %408 }
 0x141   : > { %v429_v39 = vmul.f32 %v663_v36, %v409_v38 }
 0x142   : > { %435 = vst.msk [vmem:[%s300_s10] sm:$0xff] %vm434_vm8, %v427_v37 }
 0x143   : > { %v411_v41 = vpop.xlane.xlu0 %410  ;;  %436 = vst.msk [vmem:[%s300_s10 + $0x8] sm:$0xff] %vm434_vm8, %v429_v39 }
 0x144   : > { %v431_v43 = vmul.f32 %v665_v40, %v411_v41  ;;  %v413_v44 = vpop.xlane.xlu1 %412 }
 0x145   : > { %v433_v45 = vmul.f32 %v667_v42, %v413_v44 }
 0x146   : > { %437 = vst.msk [vmem:[%s300_s10 + $0x10] sm:$0xff] %vm434_vm8, %v431_v43 }
 0x147   : > { %438 = vst.msk [vmem:[%s300_s10 + $0x18] sm:$0xff] %vm434_vm8, %v433_v45 }
 0x148 PF: > { %p16_p4 = scmp.ge.s32.totalorder %s843_s17, 4   ;;  %s1081_s12 = smov %s782_s13 }
 0x149   : > { %s1082_s13 = smov %s786_s14  ;;  %s1083_s14 = smov %s853_s20 }
 0x14a   : > { %s1084_s15 = smov %s843_s17  ;;  %18 = sbr.rel (!%p16_p4) target bundleno = 5 (0x5), region = 96 }
 0x151   :  { %461 = vsyncpa [#allocation3], 1 }
 0x152   :  { %463 = vsyncpa [#allocation3 + $0x1], 1 }
 0x153   :  { %464 = vsyncpa [#allocation5], 1 }
 0x154   :  { %466 = vsyncpa [#allocation5 + $0x1], 1 }

</bundles_post_ra>
